<compile_context>
chip_gen: v6e
topology: v6e:2x2x1
jax: 0.10.0
libtpu: 0.0.40
codegen_flags: <defaults>
</compile_context>

<pallas_src>
import jax
import jax.numpy as jnp
from jax.experimental import pallas as pl
from jax.experimental.pallas import tpu as pltpu


def _budget_and_vmem_limit():
    """Generation-aware (per-input block budget, scoped-VMEM limit)."""
    phys = None
    try:
        phys = pltpu.get_tpu_info().vmem_capacity_bytes
    except Exception:  # API unavailable -> conservative (v7x-sized) default
        phys = None
    if phys is None:
        phys = 64 << 20
    if phys >= (100 << 20):          # v5e / v6e: 128 MiB physical VMEM
        return 8 << 20, 64 << 20
    return 4 << 20, 32 << 20         # v7x: 64 MiB physical VMEM per TC


def _largest_divisor_leq(n, cap):
    cap = max(1, min(n, cap))
    for d in range(cap, 0, -1):
        if n % d == 0:
            return d
    return 1


def _plan_tiling(n, rows, lanes, max_itemsize, min_itemsize, budget_bytes):
    """Pick (batch_tile, tile_rows, ragged, packing)."""
    packing = max(8, 32 // max(1, min_itemsize))   # f32:8, bf16:16, i8/bool:32
    rows_budget = max(1, budget_bytes // (lanes * max_itemsize))
    if rows_budget >= rows:
        # A whole image fits the budget: fuse batch entries into the block.
        b_tile = _largest_divisor_leq(n, rows_budget // rows)
        # Keep >= 2 batch grid steps when possible so a 2-TC chip (v7x) has
        # parallel work even when everything would fit in one block.
        if b_tile == n and n > 1:
            b_tile = _largest_divisor_leq(n, n // 2)
        return b_tile, rows, False, packing
    b_tile = 1
    if rows <= packing:
        return b_tile, rows, False, packing
    # Prefer a packing-aligned tile that exactly divides rows (no ragged tail),
    # but only if it stays within 2x of the budget-sized tile.
    best = 0
    t = (rows_budget // packing) * packing
    while t >= packing:
        if rows % t == 0:
            best = t
            break
        t -= packing
    if best and best * 2 >= rows_budget:
        return b_tile, best, False, packing
    tile_rows = max(packing, (rows_budget // packing) * packing)
    return b_tile, tile_rows, (rows % tile_rows) != 0, packing


def _make_kernel(tile_rows, lanes, rows, acc_rows, r_per_split, ragged):
    def kernel(pred_ref, gt_ref, mask_ref, num_ref, den_ref):
        s = pl.program_id(1)   # independent parallel half of the reduction
        j = pl.program_id(2)   # row-tile (reduction) axis

        @pl.when(j == 0)
        def _init():
            num_ref[...] = jnp.zeros_like(num_ref)
            den_ref[...] = jnp.zeros_like(den_ref)

        pred = pred_ref[...].astype(jnp.float32)   # (b_tile, tile_rows, lanes)
        gt = gt_ref[...].astype(jnp.float32)
        m = mask_ref[...].astype(jnp.float32)
        prod = jnp.abs(pred - gt) * m

        if ragged:
            # Last row-tile overruns the array: mask the PRODUCT itself (not
            # just its factors) so OOB garbage never reaches the accumulator.
            row = jax.lax.broadcasted_iota(jnp.int32, (tile_rows, lanes), 0)
            valid = ((s * r_per_split + j) * tile_rows + row) < rows
            prod = jnp.where(valid[None], prod, 0.0)
            m = jnp.where(valid[None], m, 0.0)

        # Fold batch-in-block, then groups of `acc_rows` sublanes: pure
        # leading-axis VPU adds; cross-lane reduce deferred to the wrapper.
        num_b = prod.sum(axis=0)
        den_b = m.sum(axis=0)
        num_ref[...] += num_b.reshape(tile_rows // acc_rows, acc_rows, lanes).sum(axis=0)
        den_ref[...] += den_b.reshape(tile_rows // acc_rows, acc_rows, lanes).sum(axis=0)

    return kernel


def mask_l1_loss(pred, gt, mask, *, batch_tile=None, tile_rows=None,
                 block_budget_bytes=None):
    """pred: (N, C, H, W); gt, mask: (N, H, W). Returns (loss, {'l1_loss': loss})."""
    n, c, h, w = pred.shape
    assert gt.shape == (n, h, w) and mask.shape == (n, h, w)

    itemsizes = [jnp.dtype(x.dtype).itemsize for x in (pred, gt, mask)]
    max_itemsize, min_itemsize = max(itemsizes), min(itemsizes)

    budget, vmem_limit = _budget_and_vmem_limit()
    if block_budget_bytes is not None:
        budget = block_budget_bytes

    # Lane-dense relayout: free contiguous reshape so the block's last dim is
    # a full 128-lane multiple whenever possible (unmasked vst path).
    hw = h * w
    lanes = 128 if hw % 128 == 0 else w
    rows = hw // lanes

    b_tile, tr, ragged, packing = _plan_tiling(
        n, rows, lanes, max_itemsize, min_itemsize, budget)
    if batch_tile is not None:
        b_tile = batch_tile
        assert n % b_tile == 0, "batch_tile must divide N"
    if tile_rows is not None:
        tr = tile_rows
        ragged = (rows % tr) != 0
    assert tr == rows or tr % packing == 0, (
        "tile_rows must equal the full row count or be a multiple of the "
        "sublane packing of the narrowest input dtype")

    num_b_tiles = n // b_tile
    r_tiles = -(-rows // tr)
    # Split the reduction axis into two independent parallel halves when it
    # divides evenly, so both v7x TensorCores have work even at N == 1.
    num_splits = 2 if (r_tiles % 2 == 0 and r_tiles >= 2) else 1
    r_per_split = r_tiles // num_splits

    acc_rows = 8 if tr % 8 == 0 else tr

    pred_r = pred.reshape(n, c, rows, lanes)   # contiguous -> no copy
    gt_r = gt.reshape(n, rows, lanes)
    mask_r = mask.reshape(n, rows, lanes)

    kernel = _make_kernel(tr, lanes, rows, acc_rows, r_per_split, ragged)

    bytes_accessed = (
        n * hw * (itemsizes[0] + itemsizes[1] + itemsizes[2])
        + 2 * num_b_tiles * num_splits * acc_rows * lanes * 4)

    num_part, den_part = pl.pallas_call(
        kernel,
        out_shape=(
            jax.ShapeDtypeStruct((num_b_tiles, num_splits, acc_rows, lanes),
                                 jnp.float32),
            jax.ShapeDtypeStruct((num_b_tiles, num_splits, acc_rows, lanes),
                                 jnp.float32),
        ),
        grid=(num_b_tiles, num_splits, r_per_split),
        in_specs=[
            # Only channel 0 of pred is ever DMA'd (no wrapper slice copy).
            pl.BlockSpec((b_tile, None, tr, lanes),
                         lambda i, s, j: (i, 0, s * r_per_split + j, 0)),
            pl.BlockSpec((b_tile, tr, lanes),
                         lambda i, s, j: (i, s * r_per_split + j, 0)),
            pl.BlockSpec((b_tile, tr, lanes),
                         lambda i, s, j: (i, s * r_per_split + j, 0)),
        ],
        out_specs=(
            pl.BlockSpec((None, None, acc_rows, lanes),
                         lambda i, s, j: (i, s, 0, 0)),
            pl.BlockSpec((None, None, acc_rows, lanes),
                         lambda i, s, j: (i, s, 0, 0)),
        ),
        compiler_params=pltpu.CompilerParams(
            dimension_semantics=("parallel", "parallel", "arbitrary"),
            vmem_limit_bytes=vmem_limit),
        cost_estimate=pl.CostEstimate(
            flops=5 * n * hw,
            transcendentals=0,
            bytes_accessed=bytes_accessed),
    )(pred_r, gt_r, mask_r)

    num = num_part.sum()
    den = den_part.sum()
    # TODO(synk): PyTorch branches on mask_sum.item() host-side; jnp.where gives
    # the same numeric result (0.0) without a host sync.
    loss = jnp.where(den == 0.0, jnp.float32(0.0), num / den)
    return loss, dict(l1_loss=loss)


if __name__ == "__main__":
    key = jax.random.PRNGKey(0)
    k_pred, k_gt, k_mask = jax.random.split(key, 3)

    def ref_fn(p, g, m):
        p = p.astype(jnp.float32)
        g = g.astype(jnp.float32)
        m = m.astype(jnp.float32)
        ms = m.sum()
        return jnp.where(ms == 0, 0.0, (jnp.abs(p[:, 0] - g) * m).sum() / ms)

    # 1) Small shapes consistent with the module (lane-dense 128 path, fused batch).
    N, C, H, W = 2, 4, 16, 16
    pred = jax.random.uniform(k_pred, (N, C, H, W), dtype=jnp.float32)
    gt = jax.random.uniform(k_gt, (N, H, W), dtype=jnp.float32)
    mask = (jax.random.uniform(k_mask, (N, H, W)) > 0.5).astype(jnp.float32)

    loss, metrics = mask_l1_loss(pred, gt, mask)
    jax.block_until_ready(loss)
    ref = ref_fn(pred, gt, mask)
    assert jnp.allclose(loss, ref, rtol=1e-5, atol=1e-6), (loss, ref)
    assert jnp.allclose(metrics["l1_loss"], ref, rtol=1e-5, atol=1e-6)

    # 2) Empty-mask branch -> 0.
    loss0, _ = mask_l1_loss(pred, gt, jnp.zeros_like(mask))
    jax.block_until_ready(loss0)
    assert jnp.allclose(loss0, 0.0), loss0

    # 3) Multi-tile + split reduction axis + ragged edge (forced small tiles).
    H2, W2 = 40, 32   # hw=1280 -> lanes=128, rows=10; tile_rows=8 -> ragged
    pred2 = jax.random.uniform(k_pred, (N, C, H2, W2), dtype=jnp.float32)
    gt2 = jax.random.uniform(k_gt, (N, H2, W2), dtype=jnp.float32)
    mask2 = (jax.random.uniform(k_mask, (N, H2, W2)) > 0.5).astype(jnp.float32)
    loss2, _ = mask_l1_loss(pred2, gt2, mask2, batch_tile=1, tile_rows=8)
    jax.block_until_ready(loss2)
    ref2 = ref_fn(pred2, gt2, mask2)
    assert jnp.allclose(loss2, ref2, rtol=1e-5, atol=1e-6), (loss2, ref2)

    # 4) Non-128-divisible H*W fallback (lanes = W) + non-multiple-of-8 acc rows.
    H3, W3 = 10, 24
    pred3 = jax.random.uniform(k_pred, (N, C, H3, W3), dtype=jnp.float32)
    gt3 = jax.random.uniform(k_gt, (N, H3, W3), dtype=jnp.float32)
    mask3 = (jax.random.uniform(k_mask, (N, H3, W3)) > 0.5).astype(jnp.float32)
    loss3, _ = mask_l1_loss(pred3, gt3, mask3)
    jax.block_until_ready(loss3)
    ref3 = ref_fn(pred3, gt3, mask3)
    assert jnp.allclose(loss3, ref3, rtol=1e-5, atol=1e-6), (loss3, ref3)

    # 5) Mixed precision (bf16 pred/gt, f32 mask) — f32 accumulation in-kernel.
    pred4 = pred.astype(jnp.bfloat16)
    gt4 = gt.astype(jnp.bfloat16)
    loss4, _ = mask_l1_loss(pred4, gt4, mask)
    jax.block_until_ready(loss4)
    ref4 = ref_fn(pred4, gt4, mask)
    assert jnp.allclose(loss4, ref4, rtol=1e-5, atol=1e-6), (loss4, ref4)

    print("KERNEL_OK")
</pallas_src>

<mosaic_0001>
module attributes {stable_mosaic.version = 11 : i64} {
  func.func @kernel(%arg0: i32, %arg1: i32, %arg2: i32, %arg3: memref<1x1x2x128xf32, #tpu.memory_space<vmem>>, %arg4: memref<1x2x128xf32, #tpu.memory_space<vmem>>, %arg5: memref<1x2x128xf32, #tpu.memory_space<vmem>>, %arg6: memref<1x1x2x128xf32, #tpu.memory_space<vmem>>, %arg7: memref<1x1x2x128xf32, #tpu.memory_space<vmem>>) attributes {dimension_semantics = [#tpu.dimension_semantics<parallel>, #tpu.dimension_semantics<parallel>, #tpu.dimension_semantics<arbitrary>], iteration_bounds = array<i64: 2, 1, 1>, scalar_prefetch = 0 : i64, scratch_operands = 0 : i64, tpu.core_type = #tpu.core_type<tc>, window_params = [{transform_indices = @transform_0, window_bounds = array<i64: 1, 1, 2, 128>}, {transform_indices = @transform_1, window_bounds = array<i64: 1, 2, 128>}, {transform_indices = @transform_2, window_bounds = array<i64: 1, 2, 128>}, {transform_indices = @transform_3, window_bounds = array<i64: 1, 1, 2, 128>}, {transform_indices = @transform_4, window_bounds = array<i64: 1, 1, 2, 128>}]} {
    %c0_i32 = arith.constant 0 : i32
    %0 = arith.cmpi eq, %arg2, %c0_i32 : i32
    %1 = arith.extui %0 : i1 to i32
    %c0_i32_0 = arith.constant 0 : i32
    %2 = arith.cmpi ne, %1, %c0_i32_0 : i32
    scf.if %2 {
      %cst_29 = arith.constant 0.000000e+00 : f32
      %28 = vector.broadcast %cst_29 : f32 to vector<2x128xf32>
      %c0_30 = arith.constant 0 : index
      %c0_31 = arith.constant 0 : index
      %c0_32 = arith.constant 0 : index
      %c0_33 = arith.constant 0 : index
      %29 = vector.load %arg6[%c0_30, %c0_31, %c0_32, %c0_33] : memref<1x1x2x128xf32, #tpu.memory_space<vmem>>, vector<1x1x2x128xf32>
      %30 = vector.shape_cast %29 : vector<1x1x2x128xf32> to vector<2x128xf32>
      %31 = vector.shape_cast %28 : vector<2x128xf32> to vector<1x1x2x128xf32>
      tpu.vector_store %arg6[%c0_30, %c0_31, %c0_32, %c0_33], %31 {strides = array<i32>} : memref<1x1x2x128xf32, #tpu.memory_space<vmem>>, vector<1x1x2x128xf32>,
      %cst_34 = arith.constant 0.000000e+00 : f32
      %32 = vector.broadcast %cst_34 : f32 to vector<2x128xf32>
      %c0_35 = arith.constant 0 : index
      %c0_36 = arith.constant 0 : index
      %c0_37 = arith.constant 0 : index
      %c0_38 = arith.constant 0 : index
      %33 = vector.load %arg7[%c0_35, %c0_36, %c0_37, %c0_38] : memref<1x1x2x128xf32, #tpu.memory_space<vmem>>, vector<1x1x2x128xf32>
      %34 = vector.shape_cast %33 : vector<1x1x2x128xf32> to vector<2x128xf32>
      %35 = vector.shape_cast %32 : vector<2x128xf32> to vector<1x1x2x128xf32>
      tpu.vector_store %arg7[%c0_35, %c0_36, %c0_37, %c0_38], %35 {strides = array<i32>} : memref<1x1x2x128xf32, #tpu.memory_space<vmem>>, vector<1x1x2x128xf32>,
    } else {
    }
    %c0 = arith.constant 0 : index
    %c0_1 = arith.constant 0 : index
    %c0_2 = arith.constant 0 : index
    %c0_3 = arith.constant 0 : index
    %3 = vector.load %arg3[%c0, %c0_1, %c0_2, %c0_3] : memref<1x1x2x128xf32, #tpu.memory_space<vmem>>, vector<1x1x2x128xf32>
    %4 = vector.shape_cast %3 : vector<1x1x2x128xf32> to vector<1x2x128xf32>
    %c0_4 = arith.constant 0 : index
    %c0_5 = arith.constant 0 : index
    %c0_6 = arith.constant 0 : index
    %5 = vector.load %arg4[%c0_4, %c0_5, %c0_6] : memref<1x2x128xf32, #tpu.memory_space<vmem>>, vector<1x2x128xf32>
    %c0_7 = arith.constant 0 : index
    %c0_8 = arith.constant 0 : index
    %c0_9 = arith.constant 0 : index
    %6 = vector.load %arg5[%c0_7, %c0_8, %c0_9] : memref<1x2x128xf32, #tpu.memory_space<vmem>>, vector<1x2x128xf32>
    %7 = arith.subf %4, %5 : vector<1x2x128xf32>
    %8 = math.absf %7 : vector<1x2x128xf32>
    %9 = arith.mulf %8, %6 : vector<1x2x128xf32>
    %cst = arith.constant dense<0.000000e+00> : vector<2x128xf32>
    %10 = vector.multi_reduction <add>, %9, %cst [0] : vector<1x2x128xf32> to vector<2x128xf32>
    %cst_10 = arith.constant dense<0.000000e+00> : vector<2x128xf32>
    %11 = vector.multi_reduction <add>, %6, %cst_10 [0] : vector<1x2x128xf32> to vector<2x128xf32>
    %c0_11 = arith.constant 0 : index
    %c0_12 = arith.constant 0 : index
    %c0_13 = arith.constant 0 : index
    %c0_14 = arith.constant 0 : index
    %12 = vector.load %arg6[%c0_11, %c0_12, %c0_13, %c0_14] : memref<1x1x2x128xf32, #tpu.memory_space<vmem>>, vector<1x1x2x128xf32>
    %13 = vector.shape_cast %12 : vector<1x1x2x128xf32> to vector<2x128xf32>
    %14 = vector.shape_cast %10 : vector<2x128xf32> to vector<1x2x128xf32>
    %cst_15 = arith.constant dense<0.000000e+00> : vector<2x128xf32>
    %15 = vector.multi_reduction <add>, %14, %cst_15 [0] : vector<1x2x128xf32> to vector<2x128xf32>
    %16 = arith.addf %13, %15 : vector<2x128xf32>
    %c0_16 = arith.constant 0 : index
    %c0_17 = arith.constant 0 : index
    %c0_18 = arith.constant 0 : index
    %c0_19 = arith.constant 0 : index
    %17 = vector.load %arg6[%c0_16, %c0_17, %c0_18, %c0_19] : memref<1x1x2x128xf32, #tpu.memory_space<vmem>>, vector<1x1x2x128xf32>
    %18 = vector.shape_cast %17 : vector<1x1x2x128xf32> to vector<2x128xf32>
    %19 = vector.shape_cast %16 : vector<2x128xf32> to vector<1x1x2x128xf32>
    tpu.vector_store %arg6[%c0_16, %c0_17, %c0_18, %c0_19], %19 {strides = array<i32>} : memref<1x1x2x128xf32, #tpu.memory_space<vmem>>, vector<1x1x2x128xf32>,
    %c0_20 = arith.constant 0 : index
    %c0_21 = arith.constant 0 : index
    %c0_22 = arith.constant 0 : index
    %c0_23 = arith.constant 0 : index
    %20 = vector.load %arg7[%c0_20, %c0_21, %c0_22, %c0_23] : memref<1x1x2x128xf32, #tpu.memory_space<vmem>>, vector<1x1x2x128xf32>
    %21 = vector.shape_cast %20 : vector<1x1x2x128xf32> to vector<2x128xf32>
    %22 = vector.shape_cast %11 : vector<2x128xf32> to vector<1x2x128xf32>
    %cst_24 = arith.constant dense<0.000000e+00> : vector<2x128xf32>
    %23 = vector.multi_reduction <add>, %22, %cst_24 [0] : vector<1x2x128xf32> to vector<2x128xf32>
    %24 = arith.addf %21, %23 : vector<2x128xf32>
    %c0_25 = arith.constant 0 : index
    %c0_26 = arith.constant 0 : index
    %c0_27 = arith.constant 0 : index
    %c0_28 = arith.constant 0 : index
    %25 = vector.load %arg7[%c0_25, %c0_26, %c0_27, %c0_28] : memref<1x1x2x128xf32, #tpu.memory_space<vmem>>, vector<1x1x2x128xf32>
    %26 = vector.shape_cast %25 : vector<1x1x2x128xf32> to vector<2x128xf32>
    %27 = vector.shape_cast %24 : vector<2x128xf32> to vector<1x1x2x128xf32>
    tpu.vector_store %arg7[%c0_25, %c0_26, %c0_27, %c0_28], %27 {strides = array<i32>} : memref<1x1x2x128xf32, #tpu.memory_space<vmem>>, vector<1x1x2x128xf32>,
    return
  }
  func.func @transform_0(%arg0: i32, %arg1: i32, %arg2: i32) -> (i32, i32, i32, i32) {
    %c1_i32 = arith.constant 1 : i32
    %0 = arith.muli %arg1, %c1_i32 : i32
    %1 = arith.addi %0, %arg2 : i32
    %c0_i32 = arith.constant 0 : i32
    %c0_i32_0 = arith.constant 0 : i32
    %c0_i32_1 = arith.constant 0 : i32
    return %arg0, %c0_i32, %1, %c0_i32_0 : i32, i32, i32, i32
  }
  func.func @transform_1(%arg0: i32, %arg1: i32, %arg2: i32) -> (i32, i32, i32) {
    %c1_i32 = arith.constant 1 : i32
    %0 = arith.muli %arg1, %c1_i32 : i32
    %1 = arith.addi %0, %arg2 : i32
    %c0_i32 = arith.constant 0 : i32
    %c0_i32_0 = arith.constant 0 : i32
    return %arg0, %1, %c0_i32 : i32, i32, i32
  }
  func.func @transform_2(%arg0: i32, %arg1: i32, %arg2: i32) -> (i32, i32, i32) {
    %c1_i32 = arith.constant 1 : i32
    %0 = arith.muli %arg1, %c1_i32 : i32
    %1 = arith.addi %0, %arg2 : i32
    %c0_i32 = arith.constant 0 : i32
    %c0_i32_0 = arith.constant 0 : i32
    return %arg0, %1, %c0_i32 : i32, i32, i32
  }
  func.func @transform_3(%arg0: i32, %arg1: i32, %arg2: i32) -> (i32, i32, i32, i32) {
    %c0_i32 = arith.constant 0 : i32
    %c0_i32_0 = arith.constant 0 : i32
    %c0_i32_1 = arith.constant 0 : i32
    return %arg0, %arg1, %c0_i32, %c0_i32_0 : i32, i32, i32, i32
  }
  func.func @transform_4(%arg0: i32, %arg1: i32, %arg2: i32) -> (i32, i32, i32, i32) {
    %c0_i32 = arith.constant 0 : i32
    %c0_i32_0 = arith.constant 0 : i32
    %c0_i32_1 = arith.constant 0 : i32
    return %arg0, %arg1, %c0_i32, %c0_i32_0 : i32, i32, i32, i32
  }
}

</mosaic_0001>

<bundles_post_ra>
// kernel: tpu_custom_call.1
= control target key start
LH: loop header
LB: loop body
LE: loop exit
PB: predicated region body
PF: predicated region fallthrough
CT: control target
= control target key end

     0   :  { %s1119_s0 = inlined_call_operand.hbm [shape: f32[2,4,2,128], index: 0, kind: input, shape index: {}]   ;;  %s1120_s1 = inlined_call_operand.hbm [shape: f32[2,2,128], index: 1, kind: input, shape index: {}]   ;;  %s1121_s2 = inlined_call_operand.hbm [shape: f32[2,2,128], index: 2, kind: input, shape index: {}]   ;;  %s1122_s3 = inlined_call_operand.hbm [shape: f32[2,1,2,128], index: 3, kind: output, shape index: {0}]   ;;  %s1123_s4 = inlined_call_operand.hbm [shape: f32[2,1,2,128], index: 4, kind: output, shape index: {1}]  }
   0x1   :  { %1127 = sst [smem:[#allocation16_spill]] %s1119_s0 }
   0x2   :  { %1128 = sst [smem:[#allocation17_spill]] %s1120_s1 }
   0x3   :  { %10 = vsyncpa [#allocation3], 0 }
   0x4   :  { %12 = vsyncpa [#allocation3 + $0x1], 0 }
   0x5   :  { %13 = vsyncpa [#allocation6], 0 }
   0x6   :  { %15 = vsyncpa [#allocation6 + $0x1], 0 }
   0x7   :  { %16 = vsyncpa [#allocation4], 0 }
   0x8   :  { %18 = vsyncpa [#allocation4 + $0x1], 0 }
   0x9   :  { %19 = vsyncpa [#allocation10], 0 }
   0xa   :  { %21 = vsyncpa [#allocation10 + $0x1], 0  ;;  %s894_s15 = smov 0   ;;  %s896_s16 = smov 0  }
   0xb   :  { %s898_s17 = smov 0   ;;  %s900_s18 = smov 0  }
   0xc   :  { %s902_s19 = smov 0   ;;  %s904_s20 = smov 0  }
   0xd LB: > { %s925_s21 = sadd.s32 4294967295, %s861_s20   ;;  %s562_s22 = sadd.s32 4294967294, %s861_s20   ;;  %s861_s20 = sphi %s904_s20, %s27_s20   ;;  %s857_s19 = sphi %s902_s19, %s1146_s19   ;;  %s853_s18 = sphi %s900_s18, %s1145_s18   ;;  %s849_s17 = sphi %s898_s17, %s1144_s17   ;;  %s845_s16 = sphi %s896_s16, %s1143_s16   ;;  %s841_s15 = sphi %s894_s15, %s1142_s15  }
   0xe   : > { %s46_s23 = sadd.s32 1, %s857_s19  ;;  %s57_s24 = sadd.s32 1, %s849_s17 }
   0xf   : > { %p48_p0 = scmp.ge.s32.totalorder %s46_s23, 2  ;;  %p64_p1 = scmp.ne.s32.totalorder %s849_s17, %s845_s16 }
  0x10   : > { %p65_p2 = scmp.eq.s32.totalorder %s861_s20, 0  ;;  %p70_p3 = scmp.ne.s32.totalorder %s845_s16, %s841_s15 }
  0x11   : > { %s1148_s23 = smov (%p48_p0, %s46_s23), 0  ;;  %p71_p5 = scmp.eq.s32.totalorder %s925_s21, 0 }
  0x12   : > { %1129 = sst [smem:[#allocation15_spill]] %s1148_s23  ;;  %p937_p4 = por %p65_p2, %p64_p1 }
  0x13   : > { %s52_s26 = ssub.s32 %s857_s19, %s1148_s23  ;;  %p156_p6 = scmp.eq.s32.totalorder %s925_s21, 1 }
  0x14   : > { %p55_p7 = scmp.eq.s32.totalorder %s52_s26, 0  ;;  %p945_p8 = por %p71_p5, %p70_p3 }
  0x15   : > { %p949_p9 = por %p156_p6, %p64_p1  ;;  %p162_p10 = scmp.eq.s32.totalorder %s562_s22, 1 }
  0x16   : > { %s954_s29 = scalar_select %p55_p7, %s849_s17, %s57_s24  }
  0x17   : > { %p956_p11 = por %p162_p10, %p70_p3  ;;  %p612_p13 = scmp.lt.s32.totalorder %s861_s20, 2 }
  0x18   : > { %s1124_s5 = sand.u32 1, %s849_s17   ;;  %s231_s7 = sand.u32 1, %s861_s20  }
  0x19   : > { %s965_s6 = sshll.u32 %s1124_s5, 1  ;;  %p970_p0 = pnand %p612_p13, %p937_p4 }
  0x1a   : > { %s1125_s9 = sshll.u32 %s857_s19, 5  ;;  %s1135_s1 = sld [smem:[#allocation17_spill]] }
  0x1b   : > { %s235_s13 = scalar_lea.vmem [#allocation5], %s965_s6  ;;  %p572_p1 = scmp.ge.s32.totalorder %s861_s20, 1 }
  0x1c   : > { %s244_s14 = sshll.u32 %s235_s13, 4  ;;  %s982_s22 = scalar_lea.sflag [#allocation6], %s231_s7  ;;  %s245_s14 = int_to_ptr.vmem [resolvable:$true] %s244_s14 }
  0x1d   : > { %p665_p2 = pneg %p970_p0  ;;  %s676_s24 = scalar_lea.vmem %s245_s14, 32 }
  0x1e   : > { %p677_p3 = scmp.ne.s32.totalorder %s245_s14, %s676_s24  ;;  %s863_s25 = smov [#allocation5]  }
  0x1f   : > { %s681_s26 = sshll.u32 %s863_s25, 4  ;;  %s682_s26 = int_to_ptr.vmem [resolvable:$false] %s681_s26 }
  0x20   : > { %s242_s12 = scalar_lea.hbm %s1135_s1, %s1125_s9  ;;  %p679_p4 = pnand %p677_p3, %p665_p2 }
  0x21   : > { %s683_s5 = scalar_lea.vmem %s682_s26, 64  ;;  %p684_p6 = scmp.lt.s32.totalorder %s245_s14, %s682_s26 }
  0x22   : > { %p680_p5 = pneg %p679_p4  ;;  %p685_p7 = scmp.lt.s32.totalorder %s683_s5, %s676_s24 }
  0x24   : > { %p686_p10 = por %p685_p7, %p684_p6 }
  0x26   : > { %p687_p13 = pnand %p686_p10, %p680_p5 }
  0x28   : > { %690 = shalt.err (!%p687_p13)
}
  0x29   : > { %601 = dma.hbm_to_vmem [thread:$0]  (!%p970_p0), %s242_s12, 32, %s245_s14, %s982_s22  }
  0x2a   : > { %p269_p3 = scmp.lt.s32.totalorder %s861_s20, 3  ;;  %s584_s5 = sshll.u32 %s857_s19, 7 }
  0x2b   : > { %s214_s10 = scalar_lea.vmem [#allocation2], %s965_s6  ;;  %s1137_s0 = sld [smem:[#allocation16_spill]] }
  0x2c   : > { %p995_p4 = pnand %p572_p1, %p269_p3  ;;  %s224_s11 = sshll.u32 %s214_s10, 4  ;;  %s225_s11 = int_to_ptr.vmem [resolvable:$true] %s224_s11 }
  0x2d   : > { %s1138_s26 = sand.u32 1, %s849_s17   ;;  %s704_s1 = scalar_lea.vmem %s225_s11, 32 }
  0x2e   : > { %s211_s9 = scalar_lea.sflag [#allocation3], %s1138_s26  ;;  %p705_p5 = scmp.ne.s32.totalorder %s225_s11, %s704_s1 }
  0x2f   : > { %s864_s12 = smov [#allocation2]  }
  0x30   : > { %p707_p6 = pnand %p705_p5, %p665_p2  ;;  %s709_s14 = sshll.u32 %s864_s12, 4  ;;  %s710_s14 = int_to_ptr.vmem [resolvable:$false] %s709_s14 }
  0x31   : > { %s222_s25 = scalar_lea.hbm %s1137_s0, %s584_s5  ;;  %s711_s23 = scalar_lea.vmem %s710_s14, 64 }
  0x32   : > { %p708_p7 = pneg %p707_p6  ;;  %p712_p1 = scmp.lt.s32.totalorder %s225_s11, %s710_s14 }
  0x33   : > { %p713_p10 = scmp.lt.s32.totalorder %s711_s23, %s704_s1 }
  0x35   : > { %p714_p13 = por %p713_p10, %p712_p1 }
  0x37   : > { %p715_p3 = pnand %p714_p13, %p708_p7 }
  0x39   : > { %718 = shalt.err (!%p715_p3)
}
  0x3a   : > { %598 = dma.hbm_to_vmem [thread:$0]  (!%p970_p0), %s222_s25, 32, %s225_s11, %s211_s9  }
  0x3b   : > { %s1139_s5 = sshll.u32 %s857_s19, 5  ;;  %s255_s26 = scalar_lea.vmem [#allocation7], %s965_s6 }
  0x3c   : > { %s262_s24 = scalar_lea.hbm %s1121_s2, %s1139_s5  ;;  %s264_s12 = sshll.u32 %s255_s26, 4  ;;  %s265_s12 = int_to_ptr.vmem [resolvable:$true] %s264_s12 }
  0x3d   : > { %s732_s0 = scalar_lea.vmem %s265_s12, 32  ;;  %s865_s1 = smov [#allocation7]  }
  0x3e   : > { %p733_p5 = scmp.ne.s32.totalorder %s265_s12, %s732_s0  ;;  %s737_s23 = sshll.u32 %s865_s1, 4  ;;  %s738_s23 = int_to_ptr.vmem [resolvable:$false] %s737_s23 }
  0x3f   : > { %s739_s14 = scalar_lea.vmem %s738_s23, 64  ;;  %p740_p1 = scmp.lt.s32.totalorder %s265_s12, %s738_s23 }
  0x40   : > { %p735_p6 = pnand %p733_p5, %p665_p2  ;;  %p741_p10 = scmp.lt.s32.totalorder %s739_s14, %s732_s0 }
  0x42   : > { %p736_p7 = pneg %p735_p6  ;;  %p742_p13 = por %p741_p10, %p740_p1 }
  0x44   : > { %p743_p3 = pnand %p742_p13, %p736_p7 }
  0x46   : > { %746 = shalt.err (!%p743_p3)
}
  0x47   : > { %604 = dma.hbm_to_vmem [thread:$0]  (!%p970_p0), %s262_s24, 32, %s265_s12, %s982_s22  }
  0x48   : > { %273 = sbr.rel (%p995_p4) target bundleno = 128 (0x80), region = 32  ;;  %s1026_s6 = sand.u32 (!%p995_p4), 1, %s845_s16  }
  0x49   : > { %s573_s9 = sshll.u32 (!%p995_p4), %s1026_s6, 1  ;;  %s276_s11 = scalar_lea.sflag (!%p995_p4), [#allocation3], %s1026_s6 }
  0x4a   : > { %s279_s25 = scalar_lea.vmem (!%p995_p4), [#allocation2], %s573_s9 }
  0x4d   : > { %824 = dma.done.wait (%p945_p8), %s276_s11, 32  }
  0x4e   : > { %826 = vsyncadd (%p945_p8), %s276_s11, 4294967264  ;;  %s284_s0 = sand.u32 1, %s925_s21   ;;  %s288_s22 = scalar_lea.vmem [#allocation5], %s573_s9 }
  0x4f   : > { %s285_s8 = scalar_lea.sflag [#allocation6], %s284_s0 }
  0x50   : > { %828 = dma.done.wait (%p945_p8), %s285_s8, 64  }
  0x51   : > { %830 = vsyncadd (%p945_p8), %s285_s8, 4294967232  ;;  %s1039_s7 = scalar_lea.vmem [#allocation8], %s573_s9  ;;  %v866_v0 = vmov 0.0   ;;  %s336_s5 = scalar_lea.vmem [#allocation9], %s573_s9  ;;  %v346_v1 = vld [vmem:[%s279_s25] sm:$0x3] }
  0x52   : > { %344 = vst [vmem:[%s1039_s7] sm:$0x3] %v866_v0  ;;  %345 = vst [vmem:[%s336_s5] sm:$0x3] %v866_v0  ;;  %s580_s10 = sshll.u32 %s853_s18, 5  ;;  %s396_s21 = sshll.u32 %s336_s5, 4  ;;  %v347_v2 = vld [vmem:[%s288_s22] sm:$0x3]  ;;  %s1050_s21 = int_to_ptr.vmem [resolvable:$true] %s396_s21 }
  0x53   : > { %s297_s13 = scalar_lea.vmem [#allocation7], %s573_s9  ;;  %v349_v4 = vsub.f32 %v346_v1, %v347_v2  ;;  %s1048_s26 = scalar_lea.hbm %s1123_s4, %s580_s10 }
  0x54   : > { %v348_v3 = vld [vmem:[%s297_s13] sm:$0x3]  ;;  %s382_s12 = sshll.u32 %s1039_s7, 4  ;;  %s368_s1 = scalar_lea.sflag [#allocation10], %s1026_s6  ;;  %s383_s12 = int_to_ptr.vmem [resolvable:$true] %s382_s12 }
  0x55   : > { %v350_v7 = vand.u32 2147483647, %v349_v4  ;;  %s747_s23 = scalar_lea.vmem %s1050_s21, 32  ;;  %s867_s14 = smov [#allocation9]  }
  0x56   : > { %p748_p8 = scmp.ne.s32.totalorder %s1050_s21, %s747_s23  ;;  %s751_s9 = sshll.u32 %s867_s14, 4  ;;  %s752_s9 = int_to_ptr.vmem [resolvable:$false] %s751_s9 }
  0x57   : > { %v351_v9 = vmul.f32 %v350_v7, %v348_v3  ;;  %s753_s11 = scalar_lea.vmem %s752_s9, 64  ;;  %p754_p4 = scmp.lt.s32.totalorder %s1050_s21, %s752_s9 }
  0x58   : > { %p749_p0 = pnand %p748_p8, %p949_p9  ;;  %p755_p5 = scmp.lt.s32.totalorder %s753_s11, %s747_s23 }
  0x59   : > { %v358_v5 = vld [vmem:[%s336_s5] sm:$0x3]  ;;  %v354_v8 = vld [vmem:[%s1039_s7] sm:$0x3] }
  0x5a   : > { %v360_v6 = vadd.f32 %v358_v5, %v348_v3  ;;  %p750_p2 = pneg %p749_p0  ;;  %p756_p6 = por %p755_p5, %p754_p4 }
  0x5c   : > { %361 = vst [vmem:[%s336_s5] sm:$0x3] %v360_v6  ;;  %p757_p7 = pnand %p756_p6, %p750_p2 }
  0x5e   : > { %760 = shalt.err (!%p757_p7)
}
  0x5f   : > { %s761_s25 = scalar_lea.hbm %s1048_s26, 32  ;;  %s765_s22 = scalar_lea.hbm %s1123_s4, 64 }
  0x60   : > { %p762_p1 = scmp.ne.s32.totalorder %s1048_s26, %s761_s25  ;;  %p766_p3 = scmp.lt.s32.totalorder %s1048_s26, %s1123_s4 }
  0x61   : > { %p767_p8 = scmp.lt.s32.totalorder %s765_s22, %s761_s25 }
  0x62   : > { %p763_p10 = pnand %p762_p1, %p949_p9 }
  0x63   : > { %p768_p0 = por %p767_p8, %p766_p3 }
  0x64   : > { %p764_p13 = pneg %p763_p10 }
  0x66   : > { %p769_p2 = pnand %p768_p0, %p764_p13 }
  0x68   : > { %772 = shalt.err (!%p769_p2)
}
  0x69   : > { %592 = dma.vmem_to_hbm [thread:$0]  (%p949_p9), %s1050_s21, 32, %s1048_s26, %s368_s1   ;;  %v356_v10 = vadd.f32 %v354_v8, %v351_v9 }
  0x6a   : > { %s380_s23 = scalar_lea.hbm %s1122_s3, %s580_s10  ;;  %s363_s14 = scalar_lea.sflag [#allocation4], %s1026_s6 }
  0x6b   : > { %357 = vst [vmem:[%s1039_s7] sm:$0x3] %v356_v10  ;;  %s773_s9 = scalar_lea.vmem %s383_s12, 32  ;;  %s868_s11 = smov [#allocation8]  }
  0x6c   : > { %p774_p4 = scmp.ne.s32.totalorder %s383_s12, %s773_s9  ;;  %s777_s25 = sshll.u32 %s868_s11, 4  ;;  %s778_s25 = int_to_ptr.vmem [resolvable:$false] %s777_s25 }
  0x6d   : > { %s779_s0 = scalar_lea.vmem %s778_s25, 64  ;;  %p780_p7 = scmp.lt.s32.totalorder %s383_s12, %s778_s25 }
  0x6e   : > { %p775_p5 = pnand %p774_p4, %p949_p9  ;;  %p781_p1 = scmp.lt.s32.totalorder %s779_s0, %s773_s9 }
  0x70   : > { %p776_p6 = pneg %p775_p5  ;;  %p782_p10 = por %p781_p1, %p780_p7 }
  0x72   : > { %p783_p13 = pnand %p782_p10, %p776_p6 }
  0x74   : > { %786 = shalt.err (!%p783_p13)
}
  0x75   : > { %s787_s18 = scalar_lea.hbm %s380_s23, 32  ;;  %s791_s10 = scalar_lea.hbm %s1122_s3, 64 }
  0x76   : > { %p788_p3 = scmp.ne.s32.totalorder %s380_s23, %s787_s18  ;;  %p792_p2 = scmp.lt.s32.totalorder %s380_s23, %s1122_s3 }
  0x77   : > { %p793_p4 = scmp.lt.s32.totalorder %s791_s10, %s787_s18 }
  0x78   : > { %p789_p8 = pnand %p788_p3, %p949_p9 }
  0x79   : > { %p794_p5 = por %p793_p4, %p792_p2 }
  0x7a   : > { %p790_p0 = pneg %p789_p8 }
  0x7c   : > { %p795_p12 = pnand %p794_p5, %p790_p0 }
  0x7e   : > { %798 = shalt.err (!%p795_p12)
}
  0x7f   : > { %591 = dma.vmem_to_hbm [thread:$0]  (%p949_p9), %s383_s12, 32, %s380_s23, %s363_s14  }
  0x80 PF: > { %s408_s1 = sand.u32 1, %s841_s15   ;;  %p1140_p6 = scmp.ge.s32.totalorder %s861_s20, 2 }
  0x81   : > { %s409_s8 = scalar_lea.sflag [#allocation4], %s408_s1 }
  0x82   : > { %p606_p7 = pnand %p1140_p6, %p956_p11 }
  0x84   : > { %p607_p1 = pneg %p606_p7 }
  0x86   : > { %832 = dma.done.wait (%p607_p1), %s409_s8, 32  }
  0x87   : > { %834 = vsyncadd (%p607_p1), %s409_s8, 4294967264  ;;  %s418_s22 = scalar_lea.sflag [#allocation10], %s408_s1 }
  0x88   : > { %836 = dma.done.wait (%p607_p1), %s418_s22, 32  }
  0x89   : > { %838 = vsyncadd (%p607_p1), %s418_s22, 4294967264  ;;  %s27_s20 = sadd.s32 1, %s861_s20   ;;  %s1141_s28 = sld [smem:[#allocation15_spill]] }
  0x8a   : > { %p24_p12 = scmp.ge.s32.totalorder %s27_s20, 4   ;;  %s1142_s15 = smov %s845_s16 }
  0x8b   : > { %s1143_s16 = smov %s849_s17  ;;  %s1144_s17 = smov %s954_s29 }
  0x8c   : > { %s1145_s18 = smov %s857_s19  ;;  %26 = sbr.rel (!%p24_p12) target bundleno = 13 (0xd), region = 122 }
  0x8f   : > { %s1146_s19 = smov %s1141_s28 }
  0x91   :  { %423 = vsyncpa [#allocation3], 1 }
  0x92   :  { %425 = vsyncpa [#allocation3 + $0x1], 1 }
  0x93   :  { %426 = vsyncpa [#allocation6], 1 }
  0x94   :  { %428 = vsyncpa [#allocation6 + $0x1], 1 }
  0x95   :  { %429 = vsyncpa [#allocation4], 1 }
  0x96   :  { %431 = vsyncpa [#allocation4 + $0x1], 1 }
  0x97   :  { %432 = vsyncpa [#allocation10], 1 }
  0x98   :  { %434 = vsyncpa [#allocation10 + $0x1], 1 }

</bundles_post_ra>
